<compile_context>
chip_gen: v7x
topology: tpu7x:2x2x1
jax: 0.10.0
libtpu: 0.0.40
codegen_flags: <defaults>
</compile_context>

<pallas_src>
import functools

import jax
import jax.numpy as jnp
import numpy as np
from jax import lax
from jax.experimental import pallas as pl
from jax.experimental.pallas import tpu as pltpu


def _round_up(x, m):
    return (x + m - 1) // m * m


def _physical_vmem_bytes():
    # Per-core VMEM.  v5e/v6e: 128 MiB, v7x: 64 MiB.  Conservative fallback.
    try:
        return int(pltpu.get_tpu_info().vmem_capacity_bytes)
    except Exception:
        return 64 << 20


def _vmem_limit(*block_bytes):
    # double-buffered blocks + headroom; floor 32 MiB (>= default scoped limit
    # everywhere), capped at physical VMEM minus headroom (fixes the old
    # 96 MiB cap that exceeded v7x's 64 MiB physical VMEM).
    est = 2 * sum(int(b) for b in block_bytes) + (4 << 20)
    cap = max(_physical_vmem_bytes() - (8 << 20), 32 << 20)
    return int(min(max(est, 32 << 20), cap))


def _pad_gates(w, H, Hp):
    """Zero-pad the trailing (4*H) gate axis to (4*Hp), per gate block."""
    if Hp == H:
        return w
    lead = w.shape[:-1]
    w4 = w.reshape(lead + (4, H))
    pad = [(0, 0)] * (len(lead) + 1) + [(0, Hp - H)]
    return jnp.pad(w4, pad).reshape(lead + (4 * Hp,))


# -----------------------------------------------------------------------------
# Generic tiled  (M, K) @ (K, N) + b  kernel.  Grid is fully parallel
# (megacore-shardable); K is kept whole (E / H are small for this model).
# n_major=True puts the N axis as the slow/outer grid axis so each weight
# column tile streams from HBM exactly once (used for the huge W_lin).
# -----------------------------------------------------------------------------
def _matmul_bias_kernel(x_ref, w_ref, b_ref, out_ref):
    out_ref[...] = (
        jnp.dot(x_ref[...], w_ref[...], preferred_element_type=jnp.float32)
        + b_ref[...]
    ).astype(out_ref.dtype)


def _matmul_bias(x, w, b, *, tm=256, tn=512, out_dtype=jnp.float32,
                 n_major=False):
    """x:(M,K), w:(K,N), b:(1,N) -> (M,N) out_dtype.  bf16 MXU, f32 accum."""
    M, K = x.shape
    N = w.shape[1]

    tm = min(tm, _round_up(M, 8))      # row tile (multiple of 8 sublanes)
    tn = min(tn, _round_up(N, 128))    # col tile (multiple of 128 lanes)
    Mp, Np = _round_up(M, tm), _round_up(N, tn)

    xb = x.astype(jnp.bfloat16)
    wb = w.astype(jnp.bfloat16)
    bf = b.astype(jnp.float32)
    if Mp != M:
        xb = jnp.pad(xb, ((0, Mp - M), (0, 0)))
    if Np != N:
        wb = jnp.pad(wb, ((0, 0), (0, Np - N)))
        bf = jnp.pad(bf, ((0, 0), (0, Np - N)))

    if n_major:
        # N outer (slow) / M inner (fast): each W column tile is DMA'd once,
        # only the (small) activation tile re-streams.
        grid = (Np // tn, Mp // tm)
        x_spec = pl.BlockSpec((tm, K), lambda j, i: (i, 0))
        w_spec = pl.BlockSpec((K, tn), lambda j, i: (0, j))
        b_spec = pl.BlockSpec((1, tn), lambda j, i: (0, j))
        o_spec = pl.BlockSpec((tm, tn), lambda j, i: (i, j))
    else:
        grid = (Mp // tm, Np // tn)
        x_spec = pl.BlockSpec((tm, K), lambda i, j: (i, 0))
        w_spec = pl.BlockSpec((K, tn), lambda i, j: (0, j))
        b_spec = pl.BlockSpec((1, tn), lambda i, j: (0, j))
        o_spec = pl.BlockSpec((tm, tn), lambda i, j: (i, j))

    out_isz = jnp.dtype(out_dtype).itemsize
    out = pl.pallas_call(
        _matmul_bias_kernel,
        out_shape=jax.ShapeDtypeStruct((Mp, Np), out_dtype),
        grid_spec=pltpu.PrefetchScalarGridSpec(
            num_scalar_prefetch=0,
            grid=grid,
            in_specs=[x_spec, w_spec, b_spec],
            out_specs=o_spec,
        ),
        compiler_params=pltpu.CompilerParams(
            dimension_semantics=("parallel", "parallel"),
            vmem_limit_bytes=_vmem_limit(
                tm * K * 2, K * tn * 2, tn * 4, tm * tn * out_isz),
        ),
        cost_estimate=pl.CostEstimate(
            flops=int(2 * Mp * K * Np),
            transcendentals=0,
            bytes_accessed=int(Mp * K * 2 + K * Np * 2 + Np * 4
                               + Mp * Np * out_isz),
        ),
    )(xb, wb, bf)

    if Mp != M or Np != N:
        out = out[:M, :N]
    return out


# -----------------------------------------------------------------------------
# Recurrent kernel: a chunk of T_chunk time steps per grid iteration.
# Only h @ W_hh + gate nonlinearities + cell update remain in the sequential
# loop.  h/c persist in f32 VMEM scratch; W_hh is copied from HBM into a
# single-buffered VMEM scratch once (at chunk 0) and reused for all chunks.
# -----------------------------------------------------------------------------
def _lstm_recurrence_kernel(gx_ref, w_hh_hbm, h_out_ref,
                            w_hh_vmem, dma_sem, h_sc, c_sc, *, unroll):
    @pl.when(pl.program_id(0) == 0)
    def _():
        # Load W_hh exactly once into its single VMEM buffer.
        cp = pltpu.make_async_copy(w_hh_hbm, w_hh_vmem, dma_sem.at[0])
        cp.start()
        cp.wait()
        # PyTorch nn.LSTM with no explicit state starts from zeros.
        h_sc[...] = jnp.zeros_like(h_sc)
        c_sc[...] = jnp.zeros_like(c_sc)

    H = h_sc.shape[-1]                 # padded to a multiple of 128
    t_chunk = gx_ref.shape[0]
    w_hh = w_hh_vmem[...]              # (H, 4H) bf16, VMEM-resident

    def step(t, carry):
        h, c = carry                   # f32 state
        gates = (gx_ref[t].astype(jnp.float32)
                 + jnp.dot(h.astype(w_hh.dtype), w_hh,
                           preferred_element_type=jnp.float32))
        # H % 128 == 0 -> every gate slice is lane-tile aligned (no XLU
        # shuffles / masked loads inside the serial critical path).
        i_g = jax.nn.sigmoid(gates[:, 0 * H:1 * H])
        f_g = jax.nn.sigmoid(gates[:, 1 * H:2 * H])
        g_g = jnp.tanh(gates[:, 2 * H:3 * H])
        o_g = jax.nn.sigmoid(gates[:, 3 * H:4 * H])
        c = f_g * c + i_g * g_g
        h = o_g * jnp.tanh(c)
        h_out_ref[t] = h.astype(h_out_ref.dtype)
        return h, c

    h, c = lax.fori_loop(0, t_chunk, step, (h_sc[...], c_sc[...]),
                         unroll=unroll)
    h_sc[...] = h
    c_sc[...] = c


def _lstm_recurrence(gates_x, w_hh, *, t_chunk=16):
    """gates_x:(T,B,4H) bf16 (pre-biased x-projection), w_hh:(H,4H)
    -> h sequence (T,B,H) bf16.  B, H are already padded (B%8==0, H%128==0)."""
    T, B, H4 = gates_x.shape
    H = H4 // 4
    gx_isz = jnp.dtype(gates_x.dtype).itemsize

    # Shrink t_chunk until the working set (double-buffered gx / h_out,
    # single-buffered W_hh, h/c state) fits the per-core VMEM budget
    # (important on v7x's 64 MiB).
    budget = max(_physical_vmem_bytes() - (16 << 20), 24 << 20)
    t_chunk = max(1, min(t_chunk, T))

    def _footprint(tc):
        return (2 * tc * B * H4 * gx_isz     # gx double buffer (bf16)
                + 2 * tc * B * H * 2         # h_out double buffer (bf16)
                + H * H4 * 2                 # W_hh single buffer (bf16)
                + 2 * B * H * 4)             # h/c f32 state

    while t_chunk > 1 and _footprint(t_chunk) > budget:
        t_chunk //= 2

    Tp = _round_up(T, t_chunk)
    if Tp != T:
        gates_x = jnp.pad(gates_x, ((0, Tp - T), (0, 0), (0, 0)))
    w_hh_b = w_hh.astype(jnp.bfloat16)

    # Unroll tuning: full unroll only while per-step live tiles fit the vreg
    # file comfortably; shallow unroll at production H to avoid spills.
    gate_bytes = B * H4 * 4
    if gate_bytes <= 128 * 1024:
        unroll = True
    elif gate_bytes <= 512 * 1024:
        unroll = 4
    else:
        unroll = 2

    hs = pl.pallas_call(
        functools.partial(_lstm_recurrence_kernel, unroll=unroll),
        out_shape=jax.ShapeDtypeStruct((Tp, B, H), jnp.bfloat16),
        grid_spec=pltpu.PrefetchScalarGridSpec(
            num_scalar_prefetch=0,
            grid=(Tp // t_chunk,),
            in_specs=[
                pl.BlockSpec((t_chunk, B, H4), lambda c: (c, 0, 0)),
                pl.BlockSpec(memory_space=pl.ANY),   # W_hh left in HBM;
            ],                                       # copied once to VMEM
            out_specs=pl.BlockSpec((t_chunk, B, H), lambda c: (c, 0, 0)),
            scratch_shapes=[
                pltpu.VMEM((H, H4), jnp.bfloat16),   # single-buffered W_hh
                pltpu.SemaphoreType.DMA((1,)),
                pltpu.VMEM((B, H), jnp.float32),     # h state
                pltpu.VMEM((B, H), jnp.float32),     # c state
            ],
        ),
        compiler_params=pltpu.CompilerParams(
            dimension_semantics=("arbitrary",),
            vmem_limit_bytes=_vmem_limit(
                t_chunk * B * H4 * gx_isz,
                t_chunk * B * H * 2,
                H * H4 * 2,
                2 * B * H * 4),
        ),
        cost_estimate=pl.CostEstimate(
            flops=int(2 * Tp * B * H * H4),
            transcendentals=int(5 * Tp * B * H),
            bytes_accessed=int(Tp * B * H4 * gx_isz + H * H4 * 2
                               + Tp * B * H * 2),
        ),
    )(gates_x, w_hh_b)

    if Tp != T:
        hs = hs[:T]
    return hs


# -----------------------------------------------------------------------------
# Wrapper reproducing DecoderRNN.forward(features, captions)
# -----------------------------------------------------------------------------
def decoder_rnn_forward(params, features, captions, *, t_chunk=16):
    """features: (B, E) f32, captions: (B, L) int32 -> (B, L, V) f32."""
    caps = captions[:, :-1]                                # (B, L-1)
    embeds = jnp.take(params["embedding"], caps, axis=0)   # (B, L-1, E)
    inputs = jnp.concatenate([features[:, None, :], embeds], axis=1)  # (B,T,E)

    B, T, E = inputs.shape
    H = params["w_hh"].shape[0]
    V = params["w_lin"].shape[1]

    # Lane/sublane-dense padding: H -> multiple of 128 (gate slices & h_out
    # lane-aligned), B -> multiple of 8 (fills sublanes / MXU rows per step).
    # Zero padding is exact: padded gate pre-activations are 0 => padded h
    # stays exactly 0 and contributes nothing downstream.
    Hp = _round_up(H, 128)
    Bp = _round_up(B, 8)

    w_ih = _pad_gates(params["w_ih"], H, Hp)               # (E, 4Hp)
    b_comb = _pad_gates(params["b_comb"], H, Hp)           # (1, 4Hp)
    w_hh = params["w_hh"]
    w_lin = params["w_lin"]
    if Hp != H:
        w_hh = _pad_gates(jnp.pad(w_hh, ((0, Hp - H), (0, 0))), H, Hp)  # (Hp,4Hp)
        w_lin = jnp.pad(w_lin, ((0, Hp - H), (0, 0)))      # (Hp, V)

    x_tbe = jnp.transpose(inputs, (1, 0, 2)).astype(jnp.float32)  # (T, B, E)
    if Bp != B:
        x_tbe = jnp.pad(x_tbe, ((0, 0), (0, Bp - B), (0, 0)))

    # (1) hoisted input projection + folded LSTM biases; bf16 output halves
    #     the HBM write here and the streaming read in the recurrence.
    gates_x = _matmul_bias(x_tbe.reshape(T * Bp, E), w_ih, b_comb,
                           out_dtype=jnp.bfloat16)         # (T*Bp, 4Hp) bf16
    gates_x = gates_x.reshape(T, Bp, 4 * Hp)

    # (2) sequential recurrence (only h @ W_hh per step), chunked over time.
    hs = _lstm_recurrence(gates_x, w_hh, t_chunk=t_chunk)  # (T, Bp, Hp) bf16

    # (3) transpose the SMALL hs tensor to batch-first (H << V), then the
    #     vocab projection with the V axis as the slow grid axis so W_lin
    #     streams from HBM exactly once; logits come out already (B, T, V)
    #     -- no full-logits transpose.
    hs_bt = jnp.transpose(hs, (1, 0, 2))[:B]               # (B, T, Hp)
    tn_log = 2048 if _physical_vmem_bytes() >= (100 << 20) else 1024
    logits = _matmul_bias(hs_bt.reshape(B * T, Hp), w_lin, params["b_lin"],
                          tm=512, tn=tn_log, n_major=True)  # (B*T, V) f32
    return logits.reshape(B, T, V)


# -----------------------------------------------------------------------------
# Pure-JAX f32 reference (for correctness check)
# -----------------------------------------------------------------------------
def decoder_rnn_reference(params, features, captions):
    caps = captions[:, :-1]
    embeds = jnp.take(params["embedding"], caps, axis=0)
    inputs = jnp.concatenate([features[:, None, :], embeds], axis=1)  # (B,T,E)
    B, T, E = inputs.shape
    H = params["w_hh"].shape[0]

    def step(carry, x_t):
        h, c = carry
        gates = (x_t @ params["w_ih"] + h @ params["w_hh"]
                 + params["b_comb"][0])
        i_g = jax.nn.sigmoid(gates[:, 0 * H:1 * H])
        f_g = jax.nn.sigmoid(gates[:, 1 * H:2 * H])
        g_g = jnp.tanh(gates[:, 2 * H:3 * H])
        o_g = jax.nn.sigmoid(gates[:, 3 * H:4 * H])
        c = f_g * c + i_g * g_g
        h = o_g * jnp.tanh(c)
        return (h, c), h

    h0 = jnp.zeros((B, H), jnp.float32)
    c0 = jnp.zeros((B, H), jnp.float32)
    _, hs = lax.scan(step, (h0, c0), jnp.transpose(inputs, (1, 0, 2)))
    hs = jnp.transpose(hs, (1, 0, 2))                        # (B, T, H)
    return hs @ params["w_lin"] + params["b_lin"][0]         # (B, T, V)


# -----------------------------------------------------------------------------
# Deterministic parameter init (shapes from DecoderRNN.__init__, num_layers=1)
# -----------------------------------------------------------------------------
def init_params(key, embed_size, hidden_size, vocab_size):
    ks = jax.random.split(key, 6)
    s = 0.1
    return {
        # nn.Embedding(vocab_size, embed_size)
        "embedding": s * jax.random.normal(ks[0], (vocab_size, embed_size),
                                           jnp.float32),
        # nn.LSTM weights, stored transposed for x @ W; gate order i,f,g,o
        "w_ih": s * jax.random.normal(ks[1], (embed_size, 4 * hidden_size),
                                      jnp.float32),
        "w_hh": s * jax.random.normal(ks[2], (hidden_size, 4 * hidden_size),
                                      jnp.float32),
        # b_ih + b_hh combined, kept 2D (1, 4H) for TPU layout
        "b_comb": s * jax.random.normal(ks[3], (1, 4 * hidden_size),
                                        jnp.float32),
        # nn.Linear(hidden_size, vocab_size), transposed
        "w_lin": s * jax.random.normal(ks[4], (hidden_size, vocab_size),
                                       jnp.float32),
        "b_lin": s * jax.random.normal(ks[5], (1, vocab_size), jnp.float32),
    }


if __name__ == "__main__":
    B = 2            # batch
    E = 32           # embed_size
    H = 32           # hidden_size
    V = 128          # vocab_size
    L = 8            # caption length -> LSTM seq len T = L (features + L-1)

    key = jax.random.PRNGKey(0)
    k_par, k_feat, k_cap = jax.random.split(key, 3)

    params = init_params(k_par, E, H, V)
    features = jax.random.normal(k_feat, (B, E), jnp.float32)
    captions = jax.random.randint(k_cap, (B, L), 0, V, jnp.int32)

    out = decoder_rnn_forward(params, features, captions)
    out = jax.block_until_ready(out)
    assert out.shape == (B, L, V), out.shape

    ref = jax.block_until_ready(decoder_rnn_reference(params, features,
                                                      captions))
    # bf16 matmul operands + bf16 gates_x/h intermediates (f32 accumulation
    # and f32 cell state) vs. pure-f32 reference -> loose tolerance.
    np.testing.assert_allclose(np.asarray(out), np.asarray(ref),
                               rtol=5e-2, atol=5e-2)

    print("KERNEL_OK")
</pallas_src>

<mosaic_0001>
module attributes {stable_mosaic.version = 11 : i64} {
  func.func @_matmul_bias_kernel(%arg0: i32, %arg1: i32, %arg2: memref<64x32xbf16, #tpu.memory_space<vmem>>, %arg3: memref<32x512xbf16, #tpu.memory_space<vmem>>, %arg4: memref<1x512xf32, #tpu.memory_space<vmem>>, %arg5: memref<64x512xbf16, #tpu.memory_space<vmem>>) attributes {dimension_semantics = [#tpu.dimension_semantics<parallel>, #tpu.dimension_semantics<parallel>], iteration_bounds = array<i64: 1, 1>, scalar_prefetch = 0 : i64, scratch_operands = 0 : i64, tpu.core_type = #tpu.core_type<tc>, window_params = [{transform_indices = @transform_0, window_bounds = array<i64: 64, 32>}, {transform_indices = @transform_1, window_bounds = array<i64: 32, 512>}, {transform_indices = @transform_2, window_bounds = array<i64: 1, 512>}, {transform_indices = @transform_3, window_bounds = array<i64: 64, 512>}]} {
    %c0 = arith.constant 0 : index
    %c0_0 = arith.constant 0 : index
    %0 = vector.load %arg2[%c0, %c0_0] : memref<64x32xbf16, #tpu.memory_space<vmem>>, vector<64x32xbf16>
    %c0_1 = arith.constant 0 : index
    %c0_2 = arith.constant 0 : index
    %1 = vector.load %arg3[%c0_1, %c0_2] : memref<32x512xbf16, #tpu.memory_space<vmem>>, vector<32x512xbf16>
    %cst = arith.constant dense<0.000000e+00> : vector<64x512xf32>
    %2 = tpu.matmul %0, %1, %cst {dimension_numbers = #tpu.dot_dimension_numbers<[1], [0], [0], [1], [0, 0, 1, 1], [], []>} : vector<64x32xbf16>, vector<32x512xbf16>, vector<64x512xf32> -> vector<64x512xf32>
    %c0_3 = arith.constant 0 : index
    %c0_4 = arith.constant 0 : index
    %3 = vector.load %arg4[%c0_3, %c0_4] : memref<1x512xf32, #tpu.memory_space<vmem>>, vector<1x512xf32>
    %4 = vector.broadcast %3 : vector<1x512xf32> to vector<64x512xf32>
    %5 = arith.addf %2, %4 : vector<64x512xf32>
    %6 = arith.truncf %5 : vector<64x512xf32> to vector<64x512xbf16>
    %c0_5 = arith.constant 0 : index
    %c0_6 = arith.constant 0 : index
    %7 = vector.load %arg5[%c0_5, %c0_6] : memref<64x512xbf16, #tpu.memory_space<vmem>>, vector<64x512xbf16>
    tpu.vector_store %arg5[%c0_5, %c0_6], %6 {strides = array<i32>} : memref<64x512xbf16, #tpu.memory_space<vmem>>, vector<64x512xbf16>,
    return
  }
  func.func @transform_0(%arg0: i32, %arg1: i32) -> (i32, i32) {
    %c0_i32 = arith.constant 0 : i32
    %c0_i32_0 = arith.constant 0 : i32
    return %arg0, %c0_i32 : i32, i32
  }
  func.func @transform_1(%arg0: i32, %arg1: i32) -> (i32, i32) {
    %c0_i32 = arith.constant 0 : i32
    %c0_i32_0 = arith.constant 0 : i32
    return %c0_i32, %arg1 : i32, i32
  }
  func.func @transform_2(%arg0: i32, %arg1: i32) -> (i32, i32) {
    %c0_i32 = arith.constant 0 : i32
    %c0_i32_0 = arith.constant 0 : i32
    return %c0_i32, %arg1 : i32, i32
  }
  func.func @transform_3(%arg0: i32, %arg1: i32) -> (i32, i32) {
    %c0_i32 = arith.constant 0 : i32
    return %arg0, %arg1 : i32, i32
  }
}

</mosaic_0001>

<bundles_post_ra>
// kernel: tpu_custom_call.1
= control target key start
LH: loop header
LB: loop body
LE: loop exit
PB: predicated region body
PF: predicated region fallthrough
CT: control target
= control target key end

     0   :  { %8 = vsyncpa [#allocation3], 0  ;;  %s655_s0 = inlined_call_operand.vmem [shape: bf16[64,32], index: 0, kind: input, shape index: {}]   ;;  %s656_s1 = inlined_call_operand.hbm [shape: bf16[32,512], index: 1, kind: input, shape index: {}]   ;;  %s657_s2 = inlined_call_operand.vmem [shape: f32[1,512], index: 2, kind: input, shape index: {}]   ;;  %s658_s3 = inlined_call_operand.hbm [shape: bf16[64,512], index: 3, kind: output, shape index: {}]  }
   0x1   :  { %9 = vsyncpa [#allocation4], 0  ;;  %s537_s12 = smov [#allocation2]   ;;  %s489_s16 = scalar_lea.hbm %s656_s1, 1024 }
   0x2   :  { %s17_s13 = sshll.u32 %s537_s12, 4  ;;  %p490_p0 = scmp.ne.s32.totalorder %s656_s1, %s489_s16  ;;  %s18_s13 = int_to_ptr.vmem [resolvable:$true] %s17_s13 }
   0x3   :  { %p493_p1 = scmp.lt.u32.totalorder %s489_s16, %s656_s1 }
   0x5   :  { %p495_p2 = pnand %p493_p1, %p490_p0 }
   0x7   :  { %498 = shalt.err (!%p495_p2)
}
   0x8   :  { %s499_s21 = scalar_lea.vmem %s18_s13, 1024  ;;  %p504_p4 = scmp.lt.s32.totalorder %s18_s13, %s18_s13 }
   0x9   :  { %p500_p3 = scmp.ne.s32.totalorder %s18_s13, %s499_s21  ;;  %p505_p5 = scmp.lt.s32.totalorder %s499_s21, %s499_s21 }
   0xb   :  { %p506_p6 = por %p505_p5, %p504_p4 }
   0xd   :  { %p507_p7 = pnand %p506_p6, %p500_p3 }
   0xf   :  { %510 = shalt.err (!%p507_p7)
}
  0x10   :  { %s538_s22 = smov 256   ;;  %s539_s23 = smov 16  }
  0x11   :  { %23 = dma.hbm_to_vmem [thread:$0]  %s656_s1, 1024, %s18_s13, [#allocation3], %s538_s22, %s538_s22, %s539_s23  }
  0x12   :  { %533 = dma.done.wait [#allocation3], 1024  }
  0x13   :  { %534 = vsyncadd [#allocation3], 4294966272  ;;  %v540_v0 = vmov 0   ;;  %v473_v1 = vld [vmem:[#allocation2 + $0x4] ss:$16 sps:$4 sm:$0xff]   ;;  %vm128_vm0 = vcmask 261120   ;;  %v48_v13 = vlaneseq }
  0x14   :  { %173 = vmatprep.mubr.bf16.mxu0 %v540_v0  ;;  %246 = vmatprep.mubr.bf16.mxu1 %v540_v0  ;;  %v475_v2 = vld [vmem:[#allocation2 + $0xc] ss:$16 sps:$4 sm:$0xff]   ;;  %v477_v3 = vld [vmem:[#allocation2] ss:$16 sps:$4 sm:$0xff]   ;;  %v478_v4 = vld [vmem:[#allocation2 + $0x8] ss:$16 sps:$4 sm:$0xff]  }
  0x15   :  { %141 = vmatprep.subr.bf16.mxu0 %v473_v1  ;;  %214 = vmatprep.subr.bf16.mxu1 %v475_v2  ;;  %v479_v5 = vld [vmem:[#allocation2 + $0x24] ss:$16 sps:$4 sm:$0xff]   ;;  %v481_v6 = vld [vmem:[#allocation2 + $0x2c] ss:$16 sps:$4 sm:$0xff]   ;;  %v483_v7 = vld [vmem:[#allocation2 + $0x20] ss:$16 sps:$4 sm:$0xff]  }
  0x16   :  { %142 = vmatpush1.bf16.msra.mxu0 %v477_v3  ;;  %215 = vmatpush1.bf16.msra.mxu1 %v478_v4  ;;  %v484_v8 = vld [vmem:[#allocation2 + $0x28] ss:$16 sps:$4 sm:$0xff]   ;;  %v485_v9 = vld [vmem:[%s655_s0] sm:$0xff]   ;;  %v487_v11 = vld [vmem:[%s655_s0 + $0x10] sm:$0xff]   ;;  %v49_v14 = vshrl.u32 %v48_v13, 7 }
  0x17   :  { %143 = vmatprep.subr.bf16.mxu0 %v479_v5  ;;  %216 = vmatprep.subr.bf16.mxu1 %v481_v6  ;;  %v486_v10 = vld [vmem:[%s655_s0 + $0x8] sm:$0xff]   ;;  %v488_v12 = vld [vmem:[%s655_s0 + $0x18] sm:$0xff]   ;;  %v46_v17 = vld [vmem:[%s657_s2] sm:$0xf]  ;;  %s541_s0 = smov [#allocation5]  }
  0x18   :  { %v50_v15 = vsub.s32 0, %v49_v14  ;;  %v58_v16 = vsub.s32 2, %v49_v14  ;;  %v54_v18 = vsub.s32 1, %v49_v14  ;;  %v62_v19 = vsub.s32 3, %v49_v14  ;;  %s404_s2 = sshll.u32 %s541_s0, 4  ;;  %s405_s2 = int_to_ptr.vmem [resolvable:$true] %s404_s2 }
  0x19   :  { %s511_s8 = scalar_lea.vmem %s405_s2, 2048  ;;  %p516_p9 = scmp.lt.s32.totalorder %s405_s2, %s405_s2 }
  0x1a   :  { %144 = vmatpush1.bf16.msra.mxu0 %v483_v7  ;;  %217 = vmatpush1.bf16.msra.mxu1 %v484_v8  ;;  %v600_v20 = vrot.slane %v46_v17, %v50_v15  ;;  %v602_v21 = vrot.slane %v46_v17, %v58_v16  ;;  %v604_v22 = vrot.slane %v46_v17, %v54_v18  ;;  %p512_p8 = scmp.ne.s32.totalorder %s405_s2, %s511_s8  ;;  %p517_p10 = scmp.lt.s32.totalorder %s511_s8, %s511_s8 }
  0x1b   :  { %v606_v23 = vrot.slane %v46_v17, %v62_v19 }
  0x1c   :  { %p518_p11 = por %p517_p10, %p516_p9 }
  0x1d   :  { %428 = vmatmul.mubr.msk.bf16.vlgmr.msra.gmra.mrb[0].mxu0 %vm128_vm0, %v485_v9  ;;  %432 = vmatmul.mubr.msk.bf16.vlgmr.msra.gmra.mrb[0].mxu1 %vm128_vm0, %v485_v9 }
  0x1e   :  { %183 = vmatprep.mubr.bf16.mxu0 %v540_v0  ;;  %256 = vmatprep.mubr.bf16.mxu1 %v540_v0  ;;  %p519_p12 = pnand %p518_p11, %p512_p8 }
  0x25   :  { %429 = vmatmul.mubr.msk.bf16.gmra.mrb[4].mxu0 %vm128_vm0, %v486_v10  ;;  %433 = vmatmul.mubr.msk.bf16.gmra.mrb[4].mxu1 %vm128_vm0, %v486_v10 }
  0x26   :  { %193 = vmatprep.mubr.bf16.mxu0 %v540_v0  ;;  %266 = vmatprep.mubr.bf16.mxu1 %v540_v0 }
  0x2d   :  { %430 = vmatmul.mubr.msk.bf16.gmra.mrb[8].mxu0 %vm128_vm0, %v487_v11  ;;  %434 = vmatmul.mubr.msk.bf16.gmra.mrb[8].mxu1 %vm128_vm0, %v487_v11 }
  0x2e   :  { %203 = vmatprep.mubr.bf16.mxu0 %v540_v0  ;;  %276 = vmatprep.mubr.bf16.mxu1 %v540_v0 }
  0x35   :  { %431 = vmatmul.mubr.msk.bf16.gmra.mrb[12].mxu0 %vm128_vm0, %v488_v12  ;;  %435 = vmatmul.mubr.msk.bf16.gmra.mrb[12].mxu1 %vm128_vm0, %v488_v12 }
  0xf0   :  { %v175_v24 = vpop.f32.mrb[0].mxu0  ;;  %v248_v25 = vpop.f32.mrb[0].mxu1 }
  0xf1   :  { %v176_v26 = vadd.f32 %v175_v24, %v600_v20  ;;  %v249_v27 = vadd.f32 %v248_v25, %v602_v21  ;;  %v177_v28 = vpop.f32.mrb[1].mxu0  ;;  %v250_v29 = vpop.f32.mrb[1].mxu1 }
  0xf2   :  { %v178_v30 = vadd.f32 %v177_v28, %v604_v22  ;;  %v251_v31 = vadd.f32 %v250_v29, %v606_v23  ;;  %v179_v32 = vpop.f32.mrb[2].mxu0  ;;  %v252_v33 = vpop.f32.mrb[2].mxu1 }
  0xf3   :  { %v180_v34 = vadd.f32 %v179_v32, %v600_v20  ;;  %v253_v35 = vadd.f32 %v252_v33, %v602_v21  ;;  %v181_v36 = vpop.f32.mrb[3].mxu0  ;;  %v254_v37 = vpop.f32.mrb[3].mxu1 }
  0xf4   :  { %v452_v38 = vpack.c.bf16 %v178_v30, %v176_v26  ;;  %v453_v39 = vpack.c.bf16 %v251_v31, %v249_v27  ;;  %v182_v40 = vadd.f32 %v181_v36, %v604_v22  ;;  %v255_v41 = vadd.f32 %v254_v37, %v606_v23 }
  0xf6   :  { %383 = vst [vmem:[#allocation5] sm:$0xff] %v452_v38  ;;  %384 = vst [vmem:[#allocation5 + $0x8] sm:$0xff] %v453_v39  ;;  %v454_v42 = vpack.c.bf16 %v182_v40, %v180_v34  ;;  %v455_v43 = vpack.c.bf16 %v255_v41, %v253_v35 }
  0xf8   :  { %385 = vst [vmem:[#allocation5 + $0x10] sm:$0xff] %v454_v42  ;;  %386 = vst [vmem:[#allocation5 + $0x18] sm:$0xff] %v455_v43  ;;  %v185_v44 = vpop.f32.mrb[4].mxu0  ;;  %v258_v45 = vpop.f32.mrb[4].mxu1 }
  0xf9   :  { %v186_v46 = vadd.f32 %v185_v44, %v600_v20  ;;  %v259_v47 = vadd.f32 %v258_v45, %v602_v21  ;;  %v187_v48 = vpop.f32.mrb[5].mxu0  ;;  %v260_v49 = vpop.f32.mrb[5].mxu1 }
  0xfa   :  { %v188_v50 = vadd.f32 %v187_v48, %v604_v22  ;;  %v261_v51 = vadd.f32 %v260_v49, %v606_v23  ;;  %v189_v52 = vpop.f32.mrb[6].mxu0  ;;  %v262_v53 = vpop.f32.mrb[6].mxu1 }
  0xfb   :  { %v190_v54 = vadd.f32 %v189_v52, %v600_v20  ;;  %v263_v55 = vadd.f32 %v262_v53, %v602_v21  ;;  %v191_v56 = vpop.f32.mrb[7].mxu0  ;;  %v264_v57 = vpop.f32.mrb[7].mxu1 }
  0xfc   :  { %v456_v58 = vpack.c.bf16 %v188_v50, %v186_v46  ;;  %v457_v59 = vpack.c.bf16 %v261_v51, %v259_v47  ;;  %v192_v60 = vadd.f32 %v191_v56, %v604_v22  ;;  %v265_v61 = vadd.f32 %v264_v57, %v606_v23 }
  0xfe   :  { %387 = vst [vmem:[#allocation5 + $0x20] sm:$0xff] %v456_v58  ;;  %388 = vst [vmem:[#allocation5 + $0x28] sm:$0xff] %v457_v59  ;;  %v458_v62 = vpack.c.bf16 %v192_v60, %v190_v54  ;;  %v459_v63 = vpack.c.bf16 %v265_v61, %v263_v55 }
 0x100   :  { %389 = vst [vmem:[#allocation5 + $0x30] sm:$0xff] %v458_v62  ;;  %390 = vst [vmem:[#allocation5 + $0x38] sm:$0xff] %v459_v63  ;;  %v195_v0 = vpop.f32.mrb[8].mxu0  ;;  %v268_v1 = vpop.f32.mrb[8].mxu1 }
 0x101   :  { %v196_v2 = vadd.f32 %v195_v0, %v600_v20  ;;  %v269_v3 = vadd.f32 %v268_v1, %v602_v21  ;;  %v197_v4 = vpop.f32.mrb[9].mxu0  ;;  %v270_v5 = vpop.f32.mrb[9].mxu1 }
 0x102   :  { %v198_v6 = vadd.f32 %v197_v4, %v604_v22  ;;  %v271_v7 = vadd.f32 %v270_v5, %v606_v23  ;;  %v199_v8 = vpop.f32.mrb[10].mxu0  ;;  %v272_v9 = vpop.f32.mrb[10].mxu1 }
 0x103   :  { %v200_v10 = vadd.f32 %v199_v8, %v600_v20  ;;  %v273_v11 = vadd.f32 %v272_v9, %v602_v21  ;;  %v201_v12 = vpop.f32.mrb[11].mxu0  ;;  %v274_v13 = vpop.f32.mrb[11].mxu1 }
 0x104   :  { %v460_v14 = vpack.c.bf16 %v198_v6, %v196_v2  ;;  %v461_v15 = vpack.c.bf16 %v271_v7, %v269_v3  ;;  %v202_v16 = vadd.f32 %v201_v12, %v604_v22  ;;  %v275_v17 = vadd.f32 %v274_v13, %v606_v23 }
 0x106   :  { %391 = vst [vmem:[#allocation5 + $0x40] sm:$0xff] %v460_v14  ;;  %392 = vst [vmem:[#allocation5 + $0x48] sm:$0xff] %v461_v15  ;;  %v462_v18 = vpack.c.bf16 %v202_v16, %v200_v10  ;;  %v463_v19 = vpack.c.bf16 %v275_v17, %v273_v11 }
 0x108   :  { %393 = vst [vmem:[#allocation5 + $0x50] sm:$0xff] %v462_v18  ;;  %394 = vst [vmem:[#allocation5 + $0x58] sm:$0xff] %v463_v19  ;;  %v205_v24 = vpop.f32.mrb[12].mxu0  ;;  %v278_v25 = vpop.f32.mrb[12].mxu1 }
 0x109   :  { %v206_v26 = vadd.f32 %v205_v24, %v600_v20  ;;  %v279_v27 = vadd.f32 %v278_v25, %v602_v21  ;;  %v207_v28 = vpop.f32.mrb[13].mxu0  ;;  %v280_v29 = vpop.f32.mrb[13].mxu1 }
 0x10a   :  { %v208_v30 = vadd.f32 %v207_v28, %v604_v22  ;;  %v281_v31 = vadd.f32 %v280_v29, %v606_v23  ;;  %v209_v32 = vpop.f32.mrb[14].mxu0  ;;  %v282_v33 = vpop.f32.mrb[14].mxu1 }
 0x10b   :  { %v210_v34 = vadd.f32 %v209_v32, %v600_v20  ;;  %v283_v35 = vadd.f32 %v282_v33, %v602_v21  ;;  %v211_v36 = vpop.f32.mrb[15].mxu0  ;;  %v284_v37 = vpop.f32.mrb[15].mxu1 }
 0x10c   :  { %v464_v38 = vpack.c.bf16 %v208_v30, %v206_v26  ;;  %v465_v39 = vpack.c.bf16 %v281_v31, %v279_v27  ;;  %v212_v40 = vadd.f32 %v211_v36, %v604_v22  ;;  %v285_v41 = vadd.f32 %v284_v37, %v606_v23 }
 0x10e   :  { %395 = vst [vmem:[#allocation5 + $0x60] sm:$0xff] %v464_v38  ;;  %396 = vst [vmem:[#allocation5 + $0x68] sm:$0xff] %v465_v39  ;;  %v466_v42 = vpack.c.bf16 %v212_v40, %v210_v34  ;;  %v467_v43 = vpack.c.bf16 %v285_v41, %v283_v35 }
 0x110   :  { %397 = vst [vmem:[#allocation5 + $0x70] sm:$0xff] %v466_v42  ;;  %398 = vst [vmem:[#allocation5 + $0x78] sm:$0xff] %v467_v43 }
 0x111   :  { %522 = shalt.err (!%p519_p12)
}
 0x112   :  { %s523_s11 = scalar_lea.hbm %s658_s3, 2048 }
 0x113   :  { %p524_p13 = scmp.ne.s32.totalorder %s658_s3, %s523_s11  ;;  %p527_p0 = scmp.lt.u32.totalorder %s523_s11, %s658_s3 }
 0x115   :  { %p529_p1 = pnand %p527_p0, %p524_p13 }
 0x117   :  { %532 = shalt.err (!%p529_p1)
}
 0x118   :  { %410 = dma.vmem_to_hbm [thread:$0]  %s405_s2, 2048, %s658_s3, [#allocation4], %s538_s22, %s538_s22, %s539_s23  }
 0x119   :  { %535 = dma.done.wait [#allocation4], 2048  }
 0x11a   :  { %536 = vsyncadd [#allocation4], 4294965248 }
 0x11b   :  { %414 = vsyncpa [#allocation3], 1 }
 0x11c   :  { %415 = vsyncpa [#allocation4], 1 }

</bundles_post_ra>
